<compile_context>
chip_gen: v7x
topology: tpu7x:2x2x1
jax: 0.10.0
libtpu: 0.0.40
codegen_flags: <defaults>
</compile_context>

<pallas_src>
import jax
import jax.numpy as jnp
from jax.experimental import pallas as pl
from jax.experimental.pallas import tpu as pltpu


def autoencoder_kernel(x_ref, w1_ref, b1_ref, w2_ref, b2_ref, out_ref):
    # ---- encoder: Linear(input_size -> hidden_size) + ReLU -----------------
    x = x_ref[...].astype(jnp.bfloat16)                       # (tb, D) bf16 MXU operand
    h = jnp.dot(x, w1_ref[...], preferred_element_type=jnp.float32)
    h = jnp.maximum(h + b1_ref[...], 0.0)                     # bias + ReLU in f32

    # ---- decoder: Linear(hidden_size -> input_size) + ReLU -----------------
    h16 = h.astype(jnp.bfloat16)                              # keep 2nd matmul on bf16 path
    d = jnp.dot(h16, w2_ref[...], preferred_element_type=jnp.float32)
    d = jnp.maximum(d + b2_ref[...], 0.0)

    out_ref[...] = d.astype(out_ref.dtype)


def _pick_batch_tile(B, D, H, vmem_budget_bytes):
    """Largest batch tile that divides B and keeps the tiles inside the VMEM budget."""
    # Resident bf16 weights + f32 biases (pipeline double-buffers each input).
    fixed = 2 * (2 * (D * H + H * D)) + 2 * 4 * (H + D)
    # Per batch row: x tile + out tile, f32, double-buffered.
    per_row = 2 * 4 * (2 * D)
    max_tb = max(8, (vmem_budget_bytes - fixed) // per_row)
    max_tb = min(max_tb, 512)          # cap: keep the f32 intermediate out of spill territory
    if B <= max_tb:
        return B                       # whole (small) batch in a single grid step
    for cand in (512, 384, 256, 128, 64, 32, 16, 8, 4, 2, 1):
        if cand <= max_tb and B % cand == 0:
            return cand
    return 1


def autoencoder_forward(x, w1, b1, w2, b2, *, tb=None):
    """x: (B, D); w1: (D, H); b1: (H,); w2: (H, D); b2: (D,).

    Weights are pre-transposed to (in_features, out_features), so the kernel
    computes plain x @ W + b — same math as torch.nn.Linear.
    """
    B, D = x.shape
    H = w1.shape[1]

    if tb is None:
        tb = _pick_batch_tile(B, D, H, vmem_budget_bytes=20 * 1024 * 1024)
    assert B % tb == 0, "batch must be divisible by the batch tile"

    # bf16 weights: fast MXU operand path and half the weight DMA / VMEM bytes.
    w1_bf = w1.astype(jnp.bfloat16)
    w2_bf = w2.astype(jnp.bfloat16)
    # Biases as 2-D rows so they broadcast cleanly inside the kernel.
    b1_2d = b1.reshape(1, H).astype(jnp.float32)
    b2_2d = b2.reshape(1, D).astype(jnp.float32)

    cost = pl.CostEstimate(
        flops=4 * B * D * H,           # two matmuls, 2*B*D*H flops each
        transcendentals=0,
        bytes_accessed=(x.size * x.dtype.itemsize
                        + w1_bf.size * 2 + w2_bf.size * 2
                        + b1_2d.size * 4 + b2_2d.size * 4
                        + B * D * x.dtype.itemsize),
    )

    return pl.pallas_call(
        autoencoder_kernel,
        out_shape=jax.ShapeDtypeStruct((B, D), x.dtype),
        grid_spec=pl.GridSpec(
            grid=(B // tb,),
            in_specs=[
                pl.BlockSpec((tb, D), lambda i: (i, 0)),   # x batch tile
                pl.BlockSpec((D, H), lambda i: (0, 0)),    # encoder weight (resident, DMA'd once)
                pl.BlockSpec((1, H), lambda i: (0, 0)),    # encoder bias
                pl.BlockSpec((H, D), lambda i: (0, 0)),    # decoder weight (resident, DMA'd once)
                pl.BlockSpec((1, D), lambda i: (0, 0)),    # decoder bias
            ],
            out_specs=pl.BlockSpec((tb, D), lambda i: (i, 0)),
        ),
        compiler_params=pltpu.CompilerParams(
            dimension_semantics=("parallel",),             # batch axis shards across TCs (v7x)
            vmem_limit_bytes=40 * 1024 * 1024,
        ),
        cost_estimate=cost,
    )(x, w1_bf, b1_2d, w2_bf, b2_2d)


def init_params(key, input_size, hidden_size):
    """Deterministic init mimicking nn.Linear's U(-1/sqrt(fan_in), +1/sqrt(fan_in))."""
    k1, k2, k3, k4 = jax.random.split(key, 4)
    bound1 = 1.0 / jnp.sqrt(float(input_size))
    bound2 = 1.0 / jnp.sqrt(float(hidden_size))
    # Stored already transposed: (in_features, out_features).
    w1 = jax.random.uniform(k1, (input_size, hidden_size), jnp.float32, -bound1, bound1)
    b1 = jax.random.uniform(k2, (hidden_size,), jnp.float32, -bound1, bound1)
    w2 = jax.random.uniform(k3, (hidden_size, input_size), jnp.float32, -bound2, bound2)
    b2 = jax.random.uniform(k4, (input_size,), jnp.float32, -bound2, bound2)
    return w1, b1, w2, b2


def reference_forward(x, w1, b1, w2, b2, *, mxu_dtype=jnp.bfloat16):
    """Pure-JAX reference matching the kernel's bf16-operand / f32-accumulate math."""
    h = jnp.dot(x.astype(mxu_dtype), w1.astype(mxu_dtype),
                preferred_element_type=jnp.float32)
    h = jnp.maximum(h + b1, 0.0)
    d = jnp.dot(h.astype(mxu_dtype), w2.astype(mxu_dtype),
                preferred_element_type=jnp.float32)
    return jnp.maximum(d + b2, 0.0)


if __name__ == "__main__":
    key = jax.random.PRNGKey(0)
    k_x, k_p = jax.random.split(key)

    batch = 16
    input_size = 256
    hidden_size = 128

    x = jax.random.normal(k_x, (batch, input_size), jnp.float32)
    w1, b1, w2, b2 = init_params(k_p, input_size, hidden_size)

    out = autoencoder_forward(x, w1, b1, w2, b2)   # auto tile -> tb=16, grid=(1,)
    out = jax.block_until_ready(out)
    assert out.shape == (batch, input_size)

    # Tight check against a bf16-operand / f32-accumulate reference (same math).
    ref = reference_forward(x, w1, b1, w2, b2)
    assert jnp.allclose(out, ref, atol=1e-3, rtol=1e-3), float(jnp.max(jnp.abs(out - ref)))

    # Loose sanity check against full-f32 math (difference = bf16 operand rounding only).
    ref32 = jnp.maximum(jnp.maximum(x @ w1 + b1, 0.0) @ w2 + b2, 0.0)
    assert jnp.allclose(out, ref32, atol=5e-2, rtol=5e-2)

    print("KERNEL_OK")
</pallas_src>

<mosaic_0001>
module attributes {stable_mosaic.version = 11 : i64} {
  func.func @autoencoder_kernel(%arg0: i32, %arg1: memref<16x256xf32, #tpu.memory_space<vmem>>, %arg2: memref<256x128xbf16, #tpu.memory_space<vmem>>, %arg3: memref<1x128xf32, #tpu.memory_space<vmem>>, %arg4: memref<128x256xbf16, #tpu.memory_space<vmem>>, %arg5: memref<1x256xf32, #tpu.memory_space<vmem>>, %arg6: memref<16x256xf32, #tpu.memory_space<vmem>>) attributes {dimension_semantics = [#tpu.dimension_semantics<parallel>], iteration_bounds = array<i64: 1>, scalar_prefetch = 0 : i64, scratch_operands = 0 : i64, tpu.core_type = #tpu.core_type<tc>, window_params = [{transform_indices = @transform_0, window_bounds = array<i64: 16, 256>}, {pipeline_mode = #tpu.pipeline_mode<synchronous>, transform_indices = @transform_1, window_bounds = array<i64: 256, 128>}, {pipeline_mode = #tpu.pipeline_mode<synchronous>, transform_indices = @transform_2, window_bounds = array<i64: 1, 128>}, {pipeline_mode = #tpu.pipeline_mode<synchronous>, transform_indices = @transform_3, window_bounds = array<i64: 128, 256>}, {pipeline_mode = #tpu.pipeline_mode<synchronous>, transform_indices = @transform_4, window_bounds = array<i64: 1, 256>}, {transform_indices = @transform_5, window_bounds = array<i64: 16, 256>}]} {
    %c0 = arith.constant 0 : index
    %c0_0 = arith.constant 0 : index
    %0 = vector.load %arg1[%c0, %c0_0] : memref<16x256xf32, #tpu.memory_space<vmem>>, vector<16x256xf32>
    %1 = arith.truncf %0 : vector<16x256xf32> to vector<16x256xbf16>
    %c0_1 = arith.constant 0 : index
    %c0_2 = arith.constant 0 : index
    %2 = vector.load %arg2[%c0_1, %c0_2] : memref<256x128xbf16, #tpu.memory_space<vmem>>, vector<256x128xbf16>
    %cst = arith.constant dense<0.000000e+00> : vector<16x128xf32>
    %3 = tpu.matmul %1, %2, %cst {dimension_numbers = #tpu.dot_dimension_numbers<[1], [0], [0], [1], [0, 0, 1, 1], [], []>} : vector<16x256xbf16>, vector<256x128xbf16>, vector<16x128xf32> -> vector<16x128xf32>
    %c0_3 = arith.constant 0 : index
    %c0_4 = arith.constant 0 : index
    %4 = vector.load %arg3[%c0_3, %c0_4] : memref<1x128xf32, #tpu.memory_space<vmem>>, vector<1x128xf32>
    %5 = vector.broadcast %4 : vector<1x128xf32> to vector<16x128xf32>
    %6 = arith.addf %3, %5 : vector<16x128xf32>
    %cst_5 = arith.constant 0.000000e+00 : f32
    %7 = vector.broadcast %cst_5 : f32 to vector<16x128xf32>
    %8 = arith.maximumf %6, %7 : vector<16x128xf32>
    %9 = arith.truncf %8 : vector<16x128xf32> to vector<16x128xbf16>
    %c0_6 = arith.constant 0 : index
    %c0_7 = arith.constant 0 : index
    %10 = vector.load %arg4[%c0_6, %c0_7] : memref<128x256xbf16, #tpu.memory_space<vmem>>, vector<128x256xbf16>
    %cst_8 = arith.constant dense<0.000000e+00> : vector<16x256xf32>
    %11 = tpu.matmul %9, %10, %cst_8 {dimension_numbers = #tpu.dot_dimension_numbers<[1], [0], [0], [1], [0, 0, 1, 1], [], []>} : vector<16x128xbf16>, vector<128x256xbf16>, vector<16x256xf32> -> vector<16x256xf32>
    %c0_9 = arith.constant 0 : index
    %c0_10 = arith.constant 0 : index
    %12 = vector.load %arg5[%c0_9, %c0_10] : memref<1x256xf32, #tpu.memory_space<vmem>>, vector<1x256xf32>
    %13 = vector.broadcast %12 : vector<1x256xf32> to vector<16x256xf32>
    %14 = arith.addf %11, %13 : vector<16x256xf32>
    %cst_11 = arith.constant 0.000000e+00 : f32
    %15 = vector.broadcast %cst_11 : f32 to vector<16x256xf32>
    %16 = arith.maximumf %14, %15 : vector<16x256xf32>
    %c0_12 = arith.constant 0 : index
    %c0_13 = arith.constant 0 : index
    %17 = vector.load %arg6[%c0_12, %c0_13] : memref<16x256xf32, #tpu.memory_space<vmem>>, vector<16x256xf32>
    tpu.vector_store %arg6[%c0_12, %c0_13], %16 {strides = array<i32>} : memref<16x256xf32, #tpu.memory_space<vmem>>, vector<16x256xf32>,
    return
  }
  func.func @transform_0(%arg0: i32) -> (i32, i32) {
    %c0_i32 = arith.constant 0 : i32
    %c0_i32_0 = arith.constant 0 : i32
    return %arg0, %c0_i32 : i32, i32
  }
  func.func @transform_1(%arg0: i32) -> (i32, i32) {
    %c0_i32 = arith.constant 0 : i32
    %c0_i32_0 = arith.constant 0 : i32
    %c0_i32_1 = arith.constant 0 : i32
    return %c0_i32, %c0_i32_0 : i32, i32
  }
  func.func @transform_2(%arg0: i32) -> (i32, i32) {
    %c0_i32 = arith.constant 0 : i32
    %c0_i32_0 = arith.constant 0 : i32
    %c0_i32_1 = arith.constant 0 : i32
    return %c0_i32, %c0_i32_0 : i32, i32
  }
  func.func @transform_3(%arg0: i32) -> (i32, i32) {
    %c0_i32 = arith.constant 0 : i32
    %c0_i32_0 = arith.constant 0 : i32
    %c0_i32_1 = arith.constant 0 : i32
    return %c0_i32, %c0_i32_0 : i32, i32
  }
  func.func @transform_4(%arg0: i32) -> (i32, i32) {
    %c0_i32 = arith.constant 0 : i32
    %c0_i32_0 = arith.constant 0 : i32
    %c0_i32_1 = arith.constant 0 : i32
    return %c0_i32, %c0_i32_0 : i32, i32
  }
  func.func @transform_5(%arg0: i32) -> (i32, i32) {
    %c0_i32 = arith.constant 0 : i32
    %c0_i32_0 = arith.constant 0 : i32
    return %arg0, %c0_i32 : i32, i32
  }
}

</mosaic_0001>

<bundles_post_ra>
// kernel: tpu_custom_call.1
= control target key start
LH: loop header
LB: loop body
LE: loop exit
PB: predicated region body
PF: predicated region fallthrough
CT: control target
= control target key end

     0   :  { %10 = vsyncpa [#allocation3], 0  ;;  %s726_s0 = inlined_call_operand.hbm [shape: f32[16,256], index: 0, kind: input, shape index: {}]   ;;  %s727_s1 = inlined_call_operand.hbm [shape: bf16[256,128], index: 1, kind: input, shape index: {}]   ;;  %s728_s2 = inlined_call_operand.vmem [shape: f32[1,128], index: 2, kind: input, shape index: {}]   ;;  %s729_s3 = inlined_call_operand.hbm [shape: bf16[128,256], index: 3, kind: input, shape index: {}]   ;;  %s730_s4 = inlined_call_operand.vmem [shape: f32[1,256], index: 4, kind: input, shape index: {}]   ;;  %s731_s5 = inlined_call_operand.hbm [shape: f32[16,256], index: 5, kind: output, shape index: {}]  }
   0x1   :  { %11 = vsyncpa [#allocation6], 0 }
   0x2   :  { %12 = vsyncpa [#allocation4], 0  ;;  %s625_s18 = smov [#allocation5]   ;;  %s531_s22 = scalar_lea.hbm %s727_s1, 2048 }
   0x3   :  { %s30_s19 = sshll.u32 %s625_s18, 4  ;;  %p532_p0 = scmp.ne.s32.totalorder %s727_s1, %s531_s22  ;;  %s31_s19 = int_to_ptr.vmem [resolvable:$true] %s30_s19 }
   0x4   :  { %p535_p1 = scmp.lt.u32.totalorder %s531_s22, %s727_s1 }
   0x6   :  { %p537_p2 = pnand %p535_p1, %p532_p0 }
   0x8   :  { %540 = shalt.err (!%p537_p2)
}
   0x9   :  { %s541_s27 = scalar_lea.vmem %s31_s19, 2048  ;;  %p546_p4 = scmp.lt.s32.totalorder %s31_s19, %s31_s19 }
   0xa   :  { %p542_p3 = scmp.ne.s32.totalorder %s31_s19, %s541_s27  ;;  %p547_p5 = scmp.lt.s32.totalorder %s541_s27, %s541_s27 }
   0xc   :  { %p548_p6 = por %p547_p5, %p546_p4 }
   0xe   :  { %p549_p7 = pnand %p548_p6, %p542_p3 }
  0x10   :  { %552 = shalt.err (!%p549_p7)
}
  0x11   :  { %s626_s28 = smov 64   ;;  %s627_s29 = smov 4  }
  0x12   :  { %36 = dma.hbm_to_vmem [thread:$0]  %s727_s1, 2048, %s31_s19, [#allocation6], %s626_s28, %s626_s28, %s627_s29  }
  0x13   :  { %s628_s7 = smov [#allocation2]   ;;  %s553_s11 = scalar_lea.hbm %s726_s0, 512 }
  0x14   :  { %s18_s8 = sshll.u32 %s628_s7, 4  ;;  %p554_p8 = scmp.ne.s32.totalorder %s726_s0, %s553_s11  ;;  %s19_s8 = int_to_ptr.vmem [resolvable:$true] %s18_s8 }
  0x15   :  { %p557_p9 = scmp.lt.u32.totalorder %s553_s11, %s726_s0 }
  0x17   :  { %p559_p10 = pnand %p557_p9, %p554_p8 }
  0x19   :  { %562 = shalt.err (!%p559_p10)
}
  0x1a   :  { %s563_s16 = scalar_lea.vmem %s19_s8, 512  ;;  %p568_p12 = scmp.lt.s32.totalorder %s19_s8, %s19_s8 }
  0x1b   :  { %p564_p11 = scmp.ne.s32.totalorder %s19_s8, %s563_s16  ;;  %p569_p13 = scmp.lt.s32.totalorder %s563_s16, %s563_s16 }
  0x1d   :  { %p570_p0 = por %p569_p13, %p568_p12 }
  0x1f   :  { %p571_p1 = pnand %p570_p0, %p564_p11 }
  0x21   :  { %574 = shalt.err (!%p571_p1)
}
  0x22   :  { %s629_s1 = smov 256   ;;  %s630_s17 = smov 16  }
  0x23   :  { %24 = dma.hbm_to_vmem [thread:$0]  %s726_s0, 512, %s19_s8, [#allocation3], %s629_s1, %s629_s1, %s630_s17  }
  0x24   :  { %s631_s20 = smov [#allocation7]   ;;  %s575_s24 = scalar_lea.hbm %s729_s3, 2048 }
  0x25   :  { %s44_s21 = sshll.u32 %s631_s20, 4  ;;  %p576_p2 = scmp.ne.s32.totalorder %s729_s3, %s575_s24  ;;  %s45_s21 = int_to_ptr.vmem [resolvable:$true] %s44_s21 }
  0x26   :  { %p579_p3 = scmp.lt.u32.totalorder %s575_s24, %s729_s3 }
  0x28   :  { %p581_p4 = pnand %p579_p3, %p576_p2 }
  0x2a   :  { %584 = shalt.err (!%p581_p4)
}
  0x2b   :  { %s585_s29 = scalar_lea.vmem %s45_s21, 2048  ;;  %p590_p6 = scmp.lt.s32.totalorder %s45_s21, %s45_s21 }
  0x2c   :  { %p586_p5 = scmp.ne.s32.totalorder %s45_s21, %s585_s29  ;;  %p591_p7 = scmp.lt.s32.totalorder %s585_s29, %s585_s29 }
  0x2e   :  { %p592_p8 = por %p591_p7, %p590_p6 }
  0x30   :  { %p593_p9 = pnand %p592_p8, %p586_p5 }
  0x32   :  { %596 = shalt.err (!%p593_p9)
}
  0x33   :  { %s632_s0 = smov 128   ;;  %s633_s30 = smov 8  }
  0x34   :  { %50 = dma.hbm_to_vmem [thread:$0]  %s729_s3, 2048, %s45_s21, [#allocation6], %s632_s0, %s632_s0, %s633_s30  }
  0x35   :  { %619 = dma.done.wait [#allocation3], 512  }
  0x36   :  { %620 = vsyncadd [#allocation3], 4294966784 }
  0x37   :  { %621 = dma.done.wait [#allocation6], 4096  }
  0x38   :  { %622 = vsyncadd [#allocation6], 4294963200  ;;  %v491_v0 = vld [vmem:[#allocation5 + $0x40] sm:$0xff]   ;;  %v493_v2 = vld [vmem:[#allocation5 + $0x48] sm:$0xff]   ;;  %v634_v38 = vmov 0   ;;  %v266_v51 = vlaneseq }
  0x39   :  { %v492_v1 = vld [vmem:[#allocation5] sm:$0xff]   ;;  %458 = vmatprep.subr.bf16.mxu0 %v491_v0  ;;  %v494_v3 = vld [vmem:[#allocation5 + $0x8] sm:$0xff]   ;;  %v495_v4 = vld [vmem:[#allocation5 + $0x50] sm:$0xff]   ;;  %388 = vmatprep.mubr.bf16.mxu1 %v634_v38 }
  0x3a   :  { %459 = vmatpush3.bf16.msra.mxu0 %v492_v1  ;;  %v496_v5 = vld [vmem:[#allocation5 + $0x10] sm:$0xff]   ;;  %v497_v6 = vld [vmem:[#allocation5 + $0x58] sm:$0xff]   ;;  %v499_v8 = vld [vmem:[#allocation5 + $0x60] sm:$0xff]   ;;  %v267_v52 = vshrl.u32 %v266_v51, 7 }
  0x3b   :  { %460 = vmatprep.subr.bf16.mxu0 %v493_v2  ;;  %v498_v7 = vld [vmem:[#allocation5 + $0x18] sm:$0xff]   ;;  %v500_v9 = vld [vmem:[#allocation5 + $0x20] sm:$0xff]   ;;  %v501_v10 = vld [vmem:[#allocation5 + $0x68] sm:$0xff]  }
  0x3c   :  { %v64_v11 = vld [vmem:[#allocation2 + $0x8] sm:$0xff]  ;;  %v66_v12 = vld [vmem:[#allocation2 + $0x18] sm:$0xff]  ;;  %v503_v18 = vld [vmem:[#allocation5 + $0x70] sm:$0xff]   ;;  %v268_v53 = vsub.s32 0, %v267_v52  ;;  %v272_v55 = vsub.s32 1, %v267_v52 }
  0x3d   :  { %v68_v13 = vpack.c.bf16 %v66_v12, %v64_v11  ;;  %v507_v14 = vld [vmem:[#allocation7 + $0x4] ss:$8 sps:$4 sm:$0xff]   ;;  %v509_v15 = vld [vmem:[#allocation7] ss:$8 sps:$4 sm:$0xff]   ;;  %v510_v17 = vld [vmem:[#allocation7 + $0x14] ss:$8 sps:$4 sm:$0xff]  }
  0x3e   :  { %461 = vmatpush3.bf16.msra.mxu0 %v494_v3  ;;  %v502_v16 = vld [vmem:[#allocation5 + $0x28] sm:$0xff]   ;;  %356 = vmatprep.subr.bf16.mxu1 %v507_v14  ;;  %v512_v19 = vld [vmem:[#allocation7 + $0x10] ss:$8 sps:$4 sm:$0xff]   ;;  %v516_v24 = vld [vmem:[#allocation7 + $0x34] ss:$8 sps:$4 sm:$0xff]  }
  0x3f   :  { %462 = vmatprep.subr.bf16.mxu0 %v495_v4  ;;  %236 = vmatprep.mubr.bf16.mxu0 %v68_v13  ;;  %v504_v20 = vld [vmem:[#allocation5 + $0x30] sm:$0xff]   ;;  %v513_v21 = vld [vmem:[#allocation7 + $0x24] ss:$8 sps:$4 sm:$0xff]   ;;  %v505_v22 = vld [vmem:[#allocation5 + $0x78] sm:$0xff]  }
  0x40   :  { %357 = vmatpush1.bf16.msra.mxu1 %v509_v15  ;;  %v515_v23 = vld [vmem:[#allocation7 + $0x20] ss:$8 sps:$4 sm:$0xff]   ;;  %v506_v25 = vld [vmem:[#allocation5 + $0x38] sm:$0xff]   ;;  %v65_v27 = vld [vmem:[#allocation2 + $0x10] sm:$0xff] }
  0x41   :  { %358 = vmatprep.subr.bf16.mxu1 %v510_v17  ;;  %v63_v26 = vld [vmem:[#allocation2] sm:$0xff]  ;;  %v518_v28 = vld [vmem:[#allocation7 + $0x30] ss:$8 sps:$4 sm:$0xff]   ;;  %v522_v32 = vld [vmem:[#allocation7 + $0x54] ss:$8 sps:$4 sm:$0xff]  }
  0x42   :  { %463 = vmatpush3.bf16.msra.mxu0 %v496_v5  ;;  %v67_v29 = vpack.c.bf16 %v65_v27, %v63_v26  ;;  %v519_v30 = vld [vmem:[#allocation7 + $0x44] ss:$8 sps:$4 sm:$0xff]   ;;  %v521_v31 = vld [vmem:[#allocation7 + $0x40] ss:$8 sps:$4 sm:$0xff]   ;;  %v524_v33 = vld [vmem:[#allocation7 + $0x50] ss:$8 sps:$4 sm:$0xff]  }
  0x43   :  { %464 = vmatprep.subr.bf16.mxu0 %v497_v6  ;;  %v525_v34 = vld [vmem:[#allocation7 + $0x64] ss:$8 sps:$4 sm:$0xff]   ;;  %v527_v35 = vld [vmem:[#allocation7 + $0x60] ss:$8 sps:$4 sm:$0xff]   ;;  %v528_v36 = vld [vmem:[#allocation7 + $0x74] ss:$8 sps:$4 sm:$0xff]  }
  0x44   :  { %359 = vmatpush1.bf16.msra.mxu1 %v512_v19  ;;  %v530_v37 = vld [vmem:[#allocation7 + $0x70] ss:$8 sps:$4 sm:$0xff]   ;;  %v425_v40 = vld [vmem:[%s728_s2] ss:$0 sm:$0xff]  ;;  %s635_s2 = smov [#allocation8]  }
  0x45   :  { %360 = vmatprep.subr.bf16.mxu1 %v513_v21  ;;  %v264_v54 = vld [vmem:[%s730_s4] sm:$0x3]  ;;  %s412_s11 = sshll.u32 %s635_s2, 4  ;;  %s413_s11 = int_to_ptr.vmem [resolvable:$true] %s412_s11 }
  0x46   :  { %465 = vmatpush3.bf16.msra.mxu0 %v498_v7  ;;  %v269_v56 = vrot.slane %v264_v54, %v268_v53  ;;  %v273_v57 = vrot.slane %v264_v54, %v272_v55  ;;  %s597_s4 = scalar_lea.vmem %s413_s11, 512  ;;  %p602_p11 = scmp.lt.s32.totalorder %s413_s11, %s413_s11 }
  0x47   :  { %466 = vmatprep.subr.bf16.mxu0 %v499_v8  ;;  %p598_p10 = scmp.ne.s32.totalorder %s413_s11, %s597_s4  ;;  %p603_p12 = scmp.lt.s32.totalorder %s597_s4, %s597_s4 }
  0x48   :  { %361 = vmatpush1.bf16.msra.mxu1 %v515_v23 }
  0x49   :  { %362 = vmatprep.subr.bf16.mxu1 %v516_v24  ;;  %p604_p13 = por %p603_p12, %p602_p11 }
  0x4a   :  { %467 = vmatpush3.bf16.msra.mxu0 %v500_v9 }
  0x4b   :  { %468 = vmatprep.subr.bf16.mxu0 %v501_v10  ;;  %p605_p0 = pnand %p604_p13, %p598_p10 }
  0x4c   :  { %363 = vmatpush1.bf16.msra.mxu1 %v518_v28 }
  0x4d   :  { %364 = vmatprep.subr.bf16.mxu1 %v519_v30 }
  0x4e   :  { %469 = vmatpush3.bf16.msra.mxu0 %v502_v16 }
  0x4f   :  { %470 = vmatprep.subr.bf16.mxu0 %v503_v18 }
  0x50   :  { %365 = vmatpush1.bf16.msra.mxu1 %v521_v31 }
  0x51   :  { %366 = vmatprep.subr.bf16.mxu1 %v522_v32 }
  0x52   :  { %471 = vmatpush3.bf16.msra.mxu0 %v504_v20 }
  0x53   :  { %472 = vmatprep.subr.bf16.mxu0 %v505_v22 }
  0x54   :  { %367 = vmatpush1.bf16.msra.mxu1 %v524_v33 }
  0x55   :  { %368 = vmatprep.subr.bf16.mxu1 %v525_v34 }
  0x56   :  { %473 = vmatpush3.bf16.msra.mxu0 %v506_v25 }
  0x58   :  { %369 = vmatpush1.bf16.msra.mxu1 %v527_v35 }
  0x59   :  { %237 = vmatmul.mubr.bf16.vlgmr.msra.gmra.mrb[0].mxu0 %v67_v29  ;;  %370 = vmatprep.subr.bf16.mxu1 %v528_v36 }
  0x5c   :  { %371 = vmatpush1.bf16.msra.mxu1 %v530_v37 }
 0x12c   :  { %v474_v39 = vpop.f32.mrb[0].mxu0 }
 0x12d   :  { %v475_v41 = vpop.f32.mrb[1].mxu0 }
 0x12e   :  { %v476_v42 = vadd.f32 %v475_v41, %v474_v39  ;;  %v477_v43 = vpop.f32.mrb[2].mxu0 }
 0x12f   :  { %v478_v44 = vpop.f32.mrb[3].mxu0 }
 0x130   :  { %v239_v45 = vadd.f32 %v476_v42, %v425_v40  ;;  %v479_v46 = vadd.f32 %v478_v44, %v477_v43 }
 0x132   :  { %v242_v47 = vadd.f32 %v479_v46, %v425_v40  ;;  %v245_v48 = vmax.f32 %v239_v45, 0.0 }
 0x134   :  { %v246_v49 = vmax.f32 %v242_v47, 0.0 }
 0x136   :  { %v247_v50 = vpack.c.bf16 %v246_v49, %v245_v48 }
 0x138   :  { %389 = vmatmul.mubr.bf16.vlgmr.msra.gmra.mrb[0].mxu1 %v247_v50 }
 0x20b   :  { %v390_v58 = vpop.f32.mrb[0].mxu1 }
 0x20c   :  { %v391_v59 = vadd.f32 %v390_v58, %v269_v56  ;;  %v392_v60 = vpop.f32.mrb[1].mxu1 }
 0x20d   :  { %v393_v61 = vadd.f32 %v392_v60, %v273_v57  ;;  %v394_v62 = vpop.f32.mrb[2].mxu1 }
 0x20e   :  { %v399_v63 = vmax.f32 %v391_v59, 0.0  ;;  %v395_v0 = vadd.f32 %v394_v62, %v269_v56  ;;  %v396_v1 = vpop.f32.mrb[3].mxu1 }
 0x20f   :  { %v400_v2 = vmax.f32 %v393_v61, 0.0  ;;  %v397_v3 = vadd.f32 %v396_v1, %v273_v57 }
 0x210   :  { %403 = vst [vmem:[#allocation8] sm:$0xff] %v399_v63  ;;  %v401_v4 = vmax.f32 %v395_v0, 0.0 }
 0x211   :  { %404 = vst [vmem:[#allocation8 + $0x8] sm:$0xff] %v400_v2  ;;  %v402_v5 = vmax.f32 %v397_v3, 0.0 }
 0x212   :  { %405 = vst [vmem:[#allocation8 + $0x10] sm:$0xff] %v401_v4 }
 0x213   :  { %406 = vst [vmem:[#allocation8 + $0x18] sm:$0xff] %v402_v5 }
 0x214   :  { %608 = shalt.err (!%p605_p0)
}
 0x215   :  { %s609_s14 = scalar_lea.hbm %s731_s5, 512 }
 0x216   :  { %p610_p1 = scmp.ne.s32.totalorder %s731_s5, %s609_s14  ;;  %p613_p2 = scmp.lt.u32.totalorder %s609_s14, %s731_s5 }
 0x218   :  { %p615_p3 = pnand %p613_p2, %p610_p1 }
 0x21a   :  { %618 = shalt.err (!%p615_p3)
}
 0x21b   :  { %418 = dma.vmem_to_hbm [thread:$0]  %s413_s11, 512, %s731_s5, [#allocation4], %s629_s1, %s629_s1, %s630_s17  }
 0x21c   :  { %623 = dma.done.wait [#allocation4], 512  }
 0x21d   :  { %624 = vsyncadd [#allocation4], 4294966784 }
 0x21e   :  { %422 = vsyncpa [#allocation3], 1 }
 0x21f   :  { %423 = vsyncpa [#allocation6], 1 }
 0x220   :  { %424 = vsyncpa [#allocation4], 1 }

</bundles_post_ra>
